<compile_context>
chip_gen: v7x
topology: tpu7x:2x2x1
jax: 0.10.0
libtpu: 0.0.40
codegen_flags: <defaults>
</compile_context>

<pallas_src>
import functools

import jax
import jax.numpy as jnp
from jax import lax
from jax.experimental import pallas as pl
from jax.experimental.pallas import tpu as pltpu

# BAR hyper-parameters (module defaults) and BatchNorm2d eps
ALPHA = 0.0
BETA = 0.667
GAMMA = -0.1
ZETA = 1.1
BN_EPS = 1e-5

_MAX_BLOCK_BYTES = 4 * 1024 * 1024   # per-block cap: 2 bufs x (in+out) ~ 16 MiB
_VMEM_LIMIT = 48 * 1024 * 1024       # < v7x 64 MiB physical, > v5e/v6e scoped defaults


def _pick_tiles(nc, hw, itemsize):
    """Lane-dense, VMEM-budgeted tiles; never larger than the array extents."""
    if hw <= 128:
        col_tile = hw                                   # full extent (legal block dim)
    else:
        col_tile = min((hw // 128) * 128, 2048)         # multiple of 128, <= hw
    if nc < 8:
        row_tile = nc                                   # full extent (legal block dim)
    else:
        max_rows = max(8, (_MAX_BLOCK_BYTES // (col_tile * itemsize)) // 8 * 8)
        row_tile = min((nc // 8) * 8, max_rows)         # multiple of 8, <= nc
    return row_tile, col_tile


def _stats_kernel(x_ref, sum_ref, sq_ref, *, hw, col_tile, lane, mask_cols):
    """x_ref: (row_tile, col_tile) tile of (N*C, H*W).

    Accumulates lane-dense per-row partial sum / sum(x^2) of shape (row_tile, lane)
    across the column (reduction) grid axis.
    """
    j = pl.program_id(1)

    @pl.when(j == 0)
    def _init():
        sum_ref[...] = jnp.zeros_like(sum_ref)
        sq_ref[...] = jnp.zeros_like(sq_ref)

    x = x_ref[...].astype(jnp.float32)
    if mask_cols:  # ragged HW tail: zero out columns past the true extent
        col_ids = j * col_tile + lax.broadcasted_iota(jnp.int32, x.shape, 1)
        x = jnp.where(col_ids < hw, x, 0.0)

    # 128-wide column-chunk accumulation: pure VPU adds, no cross-lane reduce here.
    nchunk = col_tile // lane
    acc_s = x[:, 0:lane]
    acc_q = acc_s * acc_s
    for k in range(1, nchunk):
        xk = x[:, k * lane:(k + 1) * lane]
        acc_s = acc_s + xk
        acc_q = acc_q + xk * xk
    sum_ref[...] += acc_s
    sq_ref[...] += acc_q


def _apply_kernel(x_ref, scale_ref, shift_ref, o_ref):
    """out = x * scale + shift (fused BN + BAR mask, per-row affine), native out dtype."""
    x = x_ref[...].astype(jnp.float32)
    o_ref[...] = (x * scale_ref[...] + shift_ref[...]).astype(o_ref.dtype)


def bar_structured_forward(x_nchw, bn_weight, bn_bias, log_alpha, u):
    """x_nchw: (N, C, H, W) in its native dtype.  Returns (N, C, H, W), same dtype."""
    n, c, h, w = x_nchw.shape
    hw = h * w
    nc = n * c
    x_flat = x_nchw.reshape(nc, hw)                     # free reshape, no transpose/cast

    itemsize = jnp.dtype(x_flat.dtype).itemsize
    row_tile, col_tile = _pick_tiles(nc, hw, itemsize)
    lane = col_tile if col_tile < 128 else 128
    grid = (pl.cdiv(nc, row_tile), pl.cdiv(hw, col_tile))
    mask_cols = (hw % col_tile) != 0

    # ---- pass 1: per-row partial sum / sum(x^2)  (row axis parallel, col axis reduce) ----
    stats_kernel = functools.partial(
        _stats_kernel, hw=hw, col_tile=col_tile, lane=lane, mask_cols=mask_cols)
    psum, psq = pl.pallas_call(
        stats_kernel,
        out_shape=(jax.ShapeDtypeStruct((nc, lane), jnp.float32),
                   jax.ShapeDtypeStruct((nc, lane), jnp.float32)),
        grid=grid,
        in_specs=[pl.BlockSpec((row_tile, col_tile), lambda i, j: (i, j))],
        out_specs=(pl.BlockSpec((row_tile, lane), lambda i, j: (i, 0)),
                   pl.BlockSpec((row_tile, lane), lambda i, j: (i, 0))),
        compiler_params=pltpu.CompilerParams(
            dimension_semantics=("parallel", "arbitrary"),
            vmem_limit_bytes=_VMEM_LIMIT),
    )(x_flat)

    # ---- tiny finalize: fold lanes, fold N, then BN + BAR gate into one affine ----
    row_sum = jnp.sum(psum, axis=1)                     # (N*C,)
    row_sq = jnp.sum(psq, axis=1)
    ch_sum = row_sum.reshape(n, c).sum(axis=0)          # (C,)
    ch_sq = row_sq.reshape(n, c).sum(axis=0)
    m = float(n * hw)
    mean = ch_sum / m
    ex2 = ch_sq / m
    # Biased (training-mode) variance. NOTE: E[x^2]-E[x]^2 in f32 can lose precision
    # when |mean| >> std; acceptable for normalized activations / this test.
    var = jnp.maximum(ex2 - mean * mean, 0.0)
    inv_std = lax.rsqrt(var + BN_EPS)

    # hard-concrete stochastic gate (cal_mask with stochastic=True); no extra clamping
    # of u so extreme draws behave exactly like the PyTorch gate.
    u_f = u.astype(jnp.float32)
    s = jax.nn.sigmoid(
        (jnp.log(u_f) - jnp.log(1.0 - u_f) + log_alpha.astype(jnp.float32)) / BETA)
    z = jnp.clip(s * (ZETA - GAMMA) + GAMMA, 0.0, 1.0)

    g = bn_weight.astype(jnp.float32) * inv_std
    scale_c = g * z                                               # (C,)
    shift_c = (bn_bias.astype(jnp.float32) - mean * g) * z        # (C,)
    scale = jnp.broadcast_to(scale_c[None, :], (n, c)).reshape(nc, 1)
    shift = jnp.broadcast_to(shift_c[None, :], (n, c)).reshape(nc, 1)

    # ---- pass 2: out = x * scale + shift  (streaming FMA, fully parallel grid) ----
    out_flat = pl.pallas_call(
        _apply_kernel,
        out_shape=jax.ShapeDtypeStruct((nc, hw), x_nchw.dtype),
        grid=grid,
        in_specs=[pl.BlockSpec((row_tile, col_tile), lambda i, j: (i, j)),
                  pl.BlockSpec((row_tile, 1), lambda i, j: (i, 0)),
                  pl.BlockSpec((row_tile, 1), lambda i, j: (i, 0))],
        out_specs=pl.BlockSpec((row_tile, col_tile), lambda i, j: (i, j)),
        compiler_params=pltpu.CompilerParams(
            dimension_semantics=("parallel", "parallel"),
            vmem_limit_bytes=_VMEM_LIMIT),
    )(x_flat, scale, shift)

    # TODO(synk): PyTorch BatchNorm2d running_mean/running_var updates and the
    # eval / hard_mask code paths are host-side module state, not implemented here.
    return out_flat.reshape(n, c, h, w)


def _reference(x_nchw, bn_weight, bn_bias, log_alpha, u):
    """Pure-JAX reference of the same forward pass (two-pass batch statistics)."""
    x = x_nchw.astype(jnp.float32)
    mean = jnp.mean(x, axis=(0, 2, 3), keepdims=True)
    var = jnp.mean((x - mean) ** 2, axis=(0, 2, 3), keepdims=True)
    bn = (x - mean) / jnp.sqrt(var + BN_EPS)
    bn = bn * bn_weight[None, :, None, None] + bn_bias[None, :, None, None]
    s = jax.nn.sigmoid((jnp.log(u) - jnp.log(1.0 - u) + log_alpha) / BETA)
    z = jnp.clip(s * (ZETA - GAMMA) + GAMMA, 0.0, 1.0)
    return (bn * z[None, :, None, None]).astype(x_nchw.dtype)


if __name__ == "__main__":
    key = jax.random.PRNGKey(0)
    k_x, k_la, k_u = jax.random.split(key, 3)

    N, C, H, W = 2, 4, 16, 16
    x = jax.random.normal(k_x, (N, C, H, W), dtype=jnp.float32)

    # BatchNorm2d default affine params
    bn_weight = jnp.ones((C,), jnp.float32)
    bn_bias = jnp.zeros((C,), jnp.float32)

    # log_alpha as initialized in the module's first forward: rand(C)*0.01 + alpha
    log_alpha = jax.random.uniform(k_la, (C,), jnp.float32) * 0.01 + ALPHA
    # stochastic gate noise u ~ U(0, 1) (training mode, stochastic=True)
    u = jax.random.uniform(k_u, (C,), jnp.float32, minval=1e-6, maxval=1.0 - 1e-6)

    fwd = jax.jit(bar_structured_forward)
    out = jax.block_until_ready(fwd(x, bn_weight, bn_bias, log_alpha, u))

    ref = _reference(x, bn_weight, bn_bias, log_alpha, u)
    assert out.shape == (N, C, H, W)
    assert out.dtype == x.dtype
    assert jnp.allclose(out, ref, atol=1e-4, rtol=1e-4)

    print("KERNEL_OK")
</pallas_src>

<mosaic_0001>
module attributes {stable_mosaic.version = 11 : i64} {
  func.func @_stats_kernel(%arg0: i32, %arg1: i32, %arg2: memref<8x256xf32, #tpu.memory_space<vmem>>, %arg3: memref<8x128xf32, #tpu.memory_space<vmem>>, %arg4: memref<8x128xf32, #tpu.memory_space<vmem>>) attributes {dimension_semantics = [#tpu.dimension_semantics<parallel>, #tpu.dimension_semantics<arbitrary>], iteration_bounds = array<i64: 1, 1>, scalar_prefetch = 0 : i64, scratch_operands = 0 : i64, tpu.core_type = #tpu.core_type<tc>, window_params = [{transform_indices = @transform_0, window_bounds = array<i64: 8, 256>}, {transform_indices = @transform_1, window_bounds = array<i64: 8, 128>}, {transform_indices = @transform_2, window_bounds = array<i64: 8, 128>}]} {
    %c0_i32 = arith.constant 0 : i32
    %0 = arith.cmpi eq, %arg1, %c0_i32 : i32
    %1 = arith.extui %0 : i1 to i32
    %c0_i32_0 = arith.constant 0 : i32
    %2 = arith.cmpi ne, %1, %c0_i32_0 : i32
    scf.if %2 {
      %cst = arith.constant 0.000000e+00 : f32
      %16 = vector.broadcast %cst : f32 to vector<8x128xf32>
      %c0_10 = arith.constant 0 : index
      %c0_11 = arith.constant 0 : index
      %17 = vector.load %arg3[%c0_10, %c0_11] : memref<8x128xf32, #tpu.memory_space<vmem>>, vector<8x128xf32>
      tpu.vector_store %arg3[%c0_10, %c0_11], %16 {strides = array<i32>} : memref<8x128xf32, #tpu.memory_space<vmem>>, vector<8x128xf32>,
      %cst_12 = arith.constant 0.000000e+00 : f32
      %18 = vector.broadcast %cst_12 : f32 to vector<8x128xf32>
      %c0_13 = arith.constant 0 : index
      %c0_14 = arith.constant 0 : index
      %19 = vector.load %arg4[%c0_13, %c0_14] : memref<8x128xf32, #tpu.memory_space<vmem>>, vector<8x128xf32>
      tpu.vector_store %arg4[%c0_13, %c0_14], %18 {strides = array<i32>} : memref<8x128xf32, #tpu.memory_space<vmem>>, vector<8x128xf32>,
    } else {
    }
    %c0 = arith.constant 0 : index
    %c0_1 = arith.constant 0 : index
    %3 = vector.load %arg2[%c0, %c0_1] : memref<8x256xf32, #tpu.memory_space<vmem>>, vector<8x256xf32>
    %4 = vector.extract_strided_slice %3 {offsets = [0, 0], sizes = [8, 128], strides = [1, 1]} : vector<8x256xf32> to vector<8x128xf32>
    %5 = arith.mulf %4, %4 : vector<8x128xf32>
    %6 = vector.extract_strided_slice %3 {offsets = [0, 128], sizes = [8, 128], strides = [1, 1]} : vector<8x256xf32> to vector<8x128xf32>
    %7 = arith.addf %4, %6 : vector<8x128xf32>
    %8 = arith.mulf %6, %6 : vector<8x128xf32>
    %9 = arith.addf %5, %8 : vector<8x128xf32>
    %c0_2 = arith.constant 0 : index
    %c0_3 = arith.constant 0 : index
    %10 = vector.load %arg3[%c0_2, %c0_3] : memref<8x128xf32, #tpu.memory_space<vmem>>, vector<8x128xf32>
    %11 = arith.addf %10, %7 : vector<8x128xf32>
    %c0_4 = arith.constant 0 : index
    %c0_5 = arith.constant 0 : index
    %12 = vector.load %arg3[%c0_4, %c0_5] : memref<8x128xf32, #tpu.memory_space<vmem>>, vector<8x128xf32>
    tpu.vector_store %arg3[%c0_4, %c0_5], %11 {strides = array<i32>} : memref<8x128xf32, #tpu.memory_space<vmem>>, vector<8x128xf32>,
    %c0_6 = arith.constant 0 : index
    %c0_7 = arith.constant 0 : index
    %13 = vector.load %arg4[%c0_6, %c0_7] : memref<8x128xf32, #tpu.memory_space<vmem>>, vector<8x128xf32>
    %14 = arith.addf %13, %9 : vector<8x128xf32>
    %c0_8 = arith.constant 0 : index
    %c0_9 = arith.constant 0 : index
    %15 = vector.load %arg4[%c0_8, %c0_9] : memref<8x128xf32, #tpu.memory_space<vmem>>, vector<8x128xf32>
    tpu.vector_store %arg4[%c0_8, %c0_9], %14 {strides = array<i32>} : memref<8x128xf32, #tpu.memory_space<vmem>>, vector<8x128xf32>,
    return
  }
  func.func @transform_0(%arg0: i32, %arg1: i32) -> (i32, i32) {
    %c0_i32 = arith.constant 0 : i32
    return %arg0, %arg1 : i32, i32
  }
  func.func @transform_1(%arg0: i32, %arg1: i32) -> (i32, i32) {
    %c0_i32 = arith.constant 0 : i32
    %c0_i32_0 = arith.constant 0 : i32
    return %arg0, %c0_i32 : i32, i32
  }
  func.func @transform_2(%arg0: i32, %arg1: i32) -> (i32, i32) {
    %c0_i32 = arith.constant 0 : i32
    %c0_i32_0 = arith.constant 0 : i32
    return %arg0, %c0_i32 : i32, i32
  }
}

module attributes {stable_mosaic.version = 11 : i64} {
  func.func @_apply_kernel(%arg0: i32, %arg1: i32, %arg2: memref<8x256xf32, #tpu.memory_space<vmem>>, %arg3: memref<8x1xf32, #tpu.memory_space<vmem>>, %arg4: memref<8x1xf32, #tpu.memory_space<vmem>>, %arg5: memref<8x256xf32, #tpu.memory_space<vmem>>) attributes {dimension_semantics = [#tpu.dimension_semantics<parallel>, #tpu.dimension_semantics<parallel>], iteration_bounds = array<i64: 1, 1>, scalar_prefetch = 0 : i64, scratch_operands = 0 : i64, tpu.core_type = #tpu.core_type<tc>, window_params = [{transform_indices = @transform_0, window_bounds = array<i64: 8, 256>}, {transform_indices = @transform_1, window_bounds = array<i64: 8, 1>}, {transform_indices = @transform_2, window_bounds = array<i64: 8, 1>}, {transform_indices = @transform_3, window_bounds = array<i64: 8, 256>}]} {
    %c0 = arith.constant 0 : index
    %c0_0 = arith.constant 0 : index
    %0 = vector.load %arg2[%c0, %c0_0] : memref<8x256xf32, #tpu.memory_space<vmem>>, vector<8x256xf32>
    %c0_1 = arith.constant 0 : index
    %c0_2 = arith.constant 0 : index
    %1 = vector.load %arg3[%c0_1, %c0_2] : memref<8x1xf32, #tpu.memory_space<vmem>>, vector<8x1xf32>
    %2 = vector.broadcast %1 : vector<8x1xf32> to vector<8x256xf32>
    %3 = arith.mulf %0, %2 : vector<8x256xf32>
    %c0_3 = arith.constant 0 : index
    %c0_4 = arith.constant 0 : index
    %4 = vector.load %arg4[%c0_3, %c0_4] : memref<8x1xf32, #tpu.memory_space<vmem>>, vector<8x1xf32>
    %5 = vector.broadcast %4 : vector<8x1xf32> to vector<8x256xf32>
    %6 = arith.addf %3, %5 : vector<8x256xf32>
    %c0_5 = arith.constant 0 : index
    %c0_6 = arith.constant 0 : index
    %7 = vector.load %arg5[%c0_5, %c0_6] : memref<8x256xf32, #tpu.memory_space<vmem>>, vector<8x256xf32>
    tpu.vector_store %arg5[%c0_5, %c0_6], %6 {strides = array<i32>} : memref<8x256xf32, #tpu.memory_space<vmem>>, vector<8x256xf32>,
    return
  }
  func.func @transform_0(%arg0: i32, %arg1: i32) -> (i32, i32) {
    %c0_i32 = arith.constant 0 : i32
    return %arg0, %arg1 : i32, i32
  }
  func.func @transform_1(%arg0: i32, %arg1: i32) -> (i32, i32) {
    %c0_i32 = arith.constant 0 : i32
    %c0_i32_0 = arith.constant 0 : i32
    return %arg0, %c0_i32 : i32, i32
  }
  func.func @transform_2(%arg0: i32, %arg1: i32) -> (i32, i32) {
    %c0_i32 = arith.constant 0 : i32
    %c0_i32_0 = arith.constant 0 : i32
    return %arg0, %c0_i32 : i32, i32
  }
  func.func @transform_3(%arg0: i32, %arg1: i32) -> (i32, i32) {
    %c0_i32 = arith.constant 0 : i32
    return %arg0, %arg1 : i32, i32
  }
}

</mosaic_0001>

<bundles_post_ra>
// kernel: mul.9
= control target key start
LH: loop header
LB: loop body
LE: loop exit
PB: predicated region body
PF: predicated region fallthrough
CT: control target
= control target key end

     0   :  { %s34_s0 = inlined_call_operand.vmem [shape: f32[4], index: 0, kind: input, shape index: {}]   ;;  %s35_s1 = inlined_call_operand.vmem [shape: f32[4], index: 1, kind: input, shape index: {}]   ;;  %s36_s2 = inlined_call_operand.vmem [shape: f32[4], index: 2, kind: output, shape index: {}]  }
   0x1   :  { %v3_v0 = vld [vmem:[%s34_s0] sm:$0x1] }
   0x2   :  { %v4_v1 = vld [vmem:[%s35_s1] sm:$0x1] }
   0x3   :  { %v7_v2 = vmul.f32 %v4_v1, %v3_v0 }
   0x5   :  { %9 = vst [vmem:[%s36_s2] sm:$0x1] %v7_v2 }

// kernel: bar_structured_forward.2
= control target key start
LH: loop header
LB: loop body
LE: loop exit
PB: predicated region body
PF: predicated region fallthrough
CT: control target
= control target key end

     0   :  { %s64_s0 = inlined_call_operand.vmem [shape: f32[8,256], index: 0, kind: input, shape index: {}]   ;;  %s65_s1 = inlined_call_operand.vmem [shape: f32[8,128], index: 1, kind: output, shape index: {0}]   ;;  %s66_s2 = inlined_call_operand.vmem [shape: f32[8,128], index: 2, kind: output, shape index: {1}]  }
   0x1   :  { %v16_v0 = vld [vmem:[%s64_s0] sm:$0xff]  ;;  %v17_v1 = vld [vmem:[%s64_s0 + $0x8] sm:$0xff] }
   0x2   :  { %v19_v2 = vadd.f32 %v17_v1, %v16_v0  ;;  %v18_v3 = vmul.f32 %v16_v0, %v16_v0  ;;  %v20_v4 = vmul.f32 %v17_v1, %v17_v1 }
   0x4   :  { %v21_v5 = vadd.f32 %v20_v4, %v18_v3  ;;  %24 = vst [vmem:[%s65_s1] sm:$0xff] %v19_v2 }
   0x6   :  { %27 = vst [vmem:[%s66_s2] sm:$0xff] %v21_v5 }

// kernel: bar_structured_forward.3
= control target key start
LH: loop header
LB: loop body
LE: loop exit
PB: predicated region body
PF: predicated region fallthrough
CT: control target
= control target key end

     0   :  { %v40_v0 = vmov 0   ;;  %s79_s1 = inlined_call_operand.vmem [shape: f32[8,1], index: 1, kind: input, shape index: {}]   ;;  %s80_s2 = inlined_call_operand.vmem [shape: f32[8,1], index: 2, kind: input, shape index: {}]   ;;  %s81_s0 = inlined_call_operand.vmem [shape: f32[8,256], index: 0, kind: input, shape index: {}]   ;;  %s82_s3 = inlined_call_operand.vmem [shape: f32[8,256], index: 3, kind: output, shape index: {}]  }
   0x1   :  { %39 = vset.pattern.permute.xlu0 %v40_v0  ;;  %v16_v1 = vld [vmem:[%s79_s1] sm:$0xff]  ;;  %v15_v5 = vld [vmem:[%s81_s0 + $0x8] sm:$0xff] }
   0x2   :  { %19 = vperm.xlu0 %39, %v16_v1   ;;  %v24_v2 = vld [vmem:[%s80_s2] sm:$0xff] }
   0x3   :  { %v14_v4 = vld [vmem:[%s81_s0] sm:$0xff] }
   0x6   :  { %27 = vperm.xlu0 %39, %v24_v2  }
  0x81   :  { %v20_v3 = vpop.permute.xlu0 %19 }
  0x82   :  { %v22_v6 = vmul.f32 %v20_v3, %v14_v4  ;;  %v23_v7 = vmul.f32 %v20_v3, %v15_v5 }
  0x85   :  { %v28_v8 = vpop.permute.xlu0 %27 }
  0x86   :  { %v30_v9 = vadd.f32 %v28_v8, %v22_v6  ;;  %v31_v10 = vadd.f32 %v28_v8, %v23_v7 }
  0x88   :  { %32 = vst [vmem:[%s82_s3] sm:$0xff] %v30_v9  ;;  %33 = vst [vmem:[%s82_s3 + $0x8] sm:$0xff] %v31_v10 }

</bundles_post_ra>
